<compile_context>
chip_gen: v6e
topology: v6e:2x2x1
jax: 0.10.0
libtpu: 0.0.40
codegen_flags: <defaults>
</compile_context>

<pallas_src>
import functools

import jax
import jax.numpy as jnp
from jax import lax
from jax.experimental import pallas as pl
from jax.experimental.pallas import tpu as pltpu


def _round_up(v, m):
    return ((v + m - 1) // m) * m


_TILE_CANDIDATES = (1024, 512, 256, 128, 64, 32, 16, 8)
_VMEM_BUDGET_BYTES = 24 * 1024 * 1024   # working-set budget, fits v5e/v6e/v7x
_VMEM_LIMIT_BYTES = 40 * 1024 * 1024    # > v5e 16 MiB default, < v7x 64 MiB physical


def _pick_tile_rows(n_rows, f_padded, batch_size, x_bytes):
    """Largest row tile whose double-buffered working set fits the VMEM budget,
    preferring >= 2 grid steps so both v7x TensorCores get work."""
    keep_cost = 2 * batch_size * f_padded * 4            # resident keep mask (f32)
    fitting = []
    for tm in _TILE_CANDIDATES:
        cost = 2 * 2 * tm * f_padded * x_bytes            # x + out tiles, double-buffered
        cost += 2 * tm * 128 * 4                          # (tm, 1) int32 idx tile (lane-padded)
        cost += keep_cost
        if cost <= _VMEM_BUDGET_BYTES:
            fitting.append(tm)
    if not fitting:
        return 8
    for tm in fitting:                                    # descending: biggest tile with >= 2 steps
        if -(-n_rows // tm) >= 2:
            return tm
    return fitting[-1]                                    # tiny input: smallest fitting tile


def _feature_dropout_kernel(idx_ref, x_ref, keep_ref, out_ref, *, scale):
    # idx_ref:  (TM, 1)  int32   -- batch index of each row in this tile
    # x_ref:    (TM, Fp)         -- input rows
    # keep_ref: (B,  Fp) float32 -- Bernoulli keep mask (exact 0/1), VMEM-resident
    # out_ref:  (TM, Fp)
    tm = x_ref.shape[0]
    b = keep_ref.shape[0]

    idx = idx_ref[...]                                        # (TM, 1)
    iota_b = lax.broadcasted_iota(jnp.int32, (tm, b), 1)      # (TM, B)
    onehot = (idx == iota_b).astype(jnp.float32)              # exact 0/1

    # gathered[r, f] == keep[batch_idxs[r], f]  (exactly 0.0 or 1.0, so the MXU
    # pass is exact at any precision; MXU has huge headroom in this mem-bound
    # kernel so the tiny contraction dim B is not on the critical path).
    gathered = jnp.dot(onehot, keep_ref[...],
                       preferred_element_type=jnp.float32)    # (TM, Fp)

    # Apply the 1/(1-p) scale (compile-time constant), then multiply in the
    # input dtype (bf16 stays bf16 on v6e/v7x; Mosaic legalizes on v5e).
    noise = (gathered * scale).astype(x_ref.dtype)
    out_ref[...] = x_ref[...] * noise


def feature_dropout(x, batch_idxs, batch_size, *, p=0.5, train=True, key=None,
                    tile_rows=None):
    """Pallas FeatureDropout forward.

    x:          [N, F] float array
    batch_idxs: [N] int array mapping each row to its batch element (in [0, batch_size))
    batch_size: number of batch elements (B), a Python int
    """
    if p < 0 or p > 1:
        raise ValueError(
            'dropout probability has to be between 0 and 1, but got {}'.format(p))

    N, F = x.shape

    # Eval mode / p == 0: identity (the PyTorch module returns a clone).
    if (not train) or p == 0.0:
        return x

    # Keep mask (exact 0/1) + scale; mirrors noise.bernoulli_(1-p).div_(1-p).
    if p == 1.0:
        keep = jnp.zeros((batch_size, F), dtype=jnp.float32)
        scale = 0.0
    else:
        if key is None:
            raise ValueError("key is required when 0 < p < 1 and train=True")
        keep = jax.random.bernoulli(key, 1.0 - p, (batch_size, F)).astype(jnp.float32)
        scale = 1.0 / (1.0 - p)

    # Lane-dense feature axis and tile-aligned row axis (padding stripped below).
    Fp = _round_up(F, 128)
    x_bytes = jnp.dtype(x.dtype).itemsize
    if tile_rows is None:
        tile_rows = _pick_tile_rows(N, Fp, batch_size, x_bytes)
    assert tile_rows % 8 == 0, "tile_rows must be a multiple of 8"
    Np = _round_up(N, tile_rows)

    x_p = x if (Np == N and Fp == F) else jnp.pad(x, ((0, Np - N), (0, Fp - F)))
    keep_p = keep if Fp == F else jnp.pad(keep, ((0, 0), (0, Fp - F)))
    idx = batch_idxs.astype(jnp.int32)
    idx_p = idx if Np == N else jnp.pad(idx, (0, Np - N))   # padded rows -> batch 0, sliced off
    idx2d = idx_p.reshape(Np, 1)

    grid = (Np // tile_rows,)

    out = pl.pallas_call(
        functools.partial(_feature_dropout_kernel, scale=float(scale)),
        out_shape=jax.ShapeDtypeStruct((Np, Fp), x.dtype),
        grid_spec=pltpu.PrefetchScalarGridSpec(
            num_scalar_prefetch=0,
            grid=grid,
            in_specs=[
                pl.BlockSpec((tile_rows, 1), lambda i: (i, 0)),       # per-row batch index
                pl.BlockSpec((tile_rows, Fp), lambda i: (i, 0)),      # input rows
                pl.BlockSpec((batch_size, Fp), lambda i: (0, 0)),     # keep mask (resident)
            ],
            out_specs=pl.BlockSpec((tile_rows, Fp), lambda i: (i, 0)),
        ),
        compiler_params=pltpu.CompilerParams(
            dimension_semantics=("parallel",),
            vmem_limit_bytes=_VMEM_LIMIT_BYTES,
        ),
    )(idx2d, x_p, keep_p)

    if Np != N or Fp != F:
        out = out[:N, :F]
    return out


if __name__ == "__main__":
    key = jax.random.PRNGKey(0)
    k_x, k_noise = jax.random.split(key)

    # Small shapes consistent with the module: total_len rows spread over
    # batch_size sentences, num_features features.  F is deliberately NOT a
    # multiple of 128 and N NOT a multiple of the tile, to exercise padding.
    N, F, B = 22, 160, 4
    p = 0.5

    x = jax.random.normal(k_x, (N, F), dtype=jnp.float32)
    # rows per batch element: 7, 4, 8, 3  (sums to N)
    batch_idxs = jnp.array([0] * 7 + [1] * 4 + [2] * 8 + [3] * 3, dtype=jnp.int32)
    assert batch_idxs.shape[0] == N

    out = feature_dropout(x, batch_idxs, B, p=p, train=True, key=k_noise)
    out = jax.block_until_ready(out)

    # Pure-JAX reference with the exact same keep-mask realization.
    keep = jax.random.bernoulli(k_noise, 1.0 - p, (B, F))
    noise_ref = keep.astype(jnp.float32) / (1.0 - p)
    ref = x * noise_ref[batch_idxs, :]

    assert out.shape == (N, F) and out.dtype == x.dtype
    assert jnp.allclose(out, ref, atol=1e-6, rtol=1e-6), "mismatch vs reference"

    # p == 1 -> output is all zeros.
    out_p1 = jax.block_until_ready(
        feature_dropout(x, batch_idxs, B, p=1.0, train=True))
    assert jnp.allclose(out_p1, 0.0), "p=1 must zero the output"

    # Eval mode is the identity.
    out_eval = jax.block_until_ready(
        feature_dropout(x, batch_idxs, B, p=p, train=False, key=k_noise))
    assert jnp.allclose(out_eval, x), "eval mode must be identity"

    # bf16 path: elementwise multiply stays in bf16 inside the kernel.
    x16 = x.astype(jnp.bfloat16)
    out16 = jax.block_until_ready(
        feature_dropout(x16, batch_idxs, B, p=p, train=True, key=k_noise))
    noise16 = keep.astype(jnp.bfloat16) * jnp.bfloat16(2.0)
    ref16 = x16 * noise16[batch_idxs, :]
    assert out16.shape == (N, F) and out16.dtype == jnp.bfloat16
    assert jnp.allclose(out16.astype(jnp.float32), ref16.astype(jnp.float32),
                        atol=1e-2, rtol=1e-2), "bf16 mismatch vs reference"

    print("KERNEL_OK")
</pallas_src>

<mosaic_0001>
module attributes {stable_mosaic.version = 11 : i64} {
  func.func @_feature_dropout_kernel(%arg0: i32, %arg1: memref<16x1xi32, #tpu.memory_space<vmem>>, %arg2: memref<16x256xf32, #tpu.memory_space<vmem>>, %arg3: memref<4x256xf32, #tpu.memory_space<vmem>>, %arg4: memref<16x256xf32, #tpu.memory_space<vmem>>) attributes {dimension_semantics = [#tpu.dimension_semantics<parallel>], iteration_bounds = array<i64: 2>, scalar_prefetch = 0 : i64, scratch_operands = 0 : i64, tpu.core_type = #tpu.core_type<tc>, window_params = [{transform_indices = @transform_0, window_bounds = array<i64: 16, 1>}, {transform_indices = @transform_1, window_bounds = array<i64: 16, 256>}, {pipeline_mode = #tpu.pipeline_mode<synchronous>, transform_indices = @transform_2, window_bounds = array<i64: 4, 256>}, {transform_indices = @transform_3, window_bounds = array<i64: 16, 256>}]} {
    %c0 = arith.constant 0 : index
    %c0_0 = arith.constant 0 : index
    %0 = vector.load %arg1[%c0, %c0_0] : memref<16x1xi32, #tpu.memory_space<vmem>>, vector<16x1xi32>
    %1 = tpu.iota {dimensions = array<i32: 1>} : vector<16x4xi32>
    %2 = vector.broadcast %0 : vector<16x1xi32> to vector<16x4xi32>
    %3 = arith.cmpi eq, %2, %1 : vector<16x4xi32>
    %4 = arith.extui %3 : vector<16x4xi1> to vector<16x4xi32>
    %5 = arith.sitofp %4 : vector<16x4xi32> to vector<16x4xf32>
    %c0_1 = arith.constant 0 : index
    %c0_2 = arith.constant 0 : index
    %6 = vector.load %arg3[%c0_1, %c0_2] : memref<4x256xf32, #tpu.memory_space<vmem>>, vector<4x256xf32>
    %cst = arith.constant dense<0.000000e+00> : vector<16x256xf32>
    %7 = tpu.matmul %5, %6, %cst {dimension_numbers = #tpu.dot_dimension_numbers<[1], [0], [0], [1], [0, 0, 1, 1], [], []>} : vector<16x4xf32>, vector<4x256xf32>, vector<16x256xf32> -> vector<16x256xf32>
    %cst_3 = arith.constant 2.000000e+00 : f32
    %8 = vector.broadcast %cst_3 : f32 to vector<16x256xf32>
    %9 = arith.mulf %7, %8 : vector<16x256xf32>
    %c0_4 = arith.constant 0 : index
    %c0_5 = arith.constant 0 : index
    %10 = vector.load %arg2[%c0_4, %c0_5] : memref<16x256xf32, #tpu.memory_space<vmem>>, vector<16x256xf32>
    %11 = arith.mulf %10, %9 : vector<16x256xf32>
    %c0_6 = arith.constant 0 : index
    %c0_7 = arith.constant 0 : index
    %12 = vector.load %arg4[%c0_6, %c0_7] : memref<16x256xf32, #tpu.memory_space<vmem>>, vector<16x256xf32>
    tpu.vector_store %arg4[%c0_6, %c0_7], %11 {strides = array<i32>} : memref<16x256xf32, #tpu.memory_space<vmem>>, vector<16x256xf32>,
    return
  }
  func.func @transform_0(%arg0: i32) -> (i32, i32) {
    %c0_i32 = arith.constant 0 : i32
    %c0_i32_0 = arith.constant 0 : i32
    return %arg0, %c0_i32 : i32, i32
  }
  func.func @transform_1(%arg0: i32) -> (i32, i32) {
    %c0_i32 = arith.constant 0 : i32
    %c0_i32_0 = arith.constant 0 : i32
    return %arg0, %c0_i32 : i32, i32
  }
  func.func @transform_2(%arg0: i32) -> (i32, i32) {
    %c0_i32 = arith.constant 0 : i32
    %c0_i32_0 = arith.constant 0 : i32
    %c0_i32_1 = arith.constant 0 : i32
    return %c0_i32, %c0_i32_0 : i32, i32
  }
  func.func @transform_3(%arg0: i32) -> (i32, i32) {
    %c0_i32 = arith.constant 0 : i32
    %c0_i32_0 = arith.constant 0 : i32
    return %arg0, %c0_i32 : i32, i32
  }
}

</mosaic_0001>

<bundles_post_ra>
// kernel: tpu_custom_call.1
= control target key start
LH: loop header
LB: loop body
LE: loop exit
PB: predicated region body
PF: predicated region fallthrough
CT: control target
= control target key end

     0   :  { %8 = vsyncpa [#allocation3], 0  ;;  %s815_s0 = inlined_call_operand.vmem [shape: s32[32,1], index: 0, kind: input, shape index: {}]   ;;  %s816_s1 = inlined_call_operand.hbm [shape: f32[32,256], index: 1, kind: input, shape index: {}]   ;;  %s817_s2 = inlined_call_operand.vmem [shape: f32[4,256], index: 2, kind: input, shape index: {}]   ;;  %s818_s3 = inlined_call_operand.hbm [shape: f32[32,256], index: 3, kind: output, shape index: {}]  }
   0x1   :  { %10 = vsyncpa [#allocation3 + $0x1], 0 }
   0x2   :  { %11 = vsyncpa [#allocation4], 0 }
   0x3   :  { %13 = vsyncpa [#allocation4 + $0x1], 0  ;;  %s644_s12 = smov 0   ;;  %s646_s13 = smov 0  }
   0x4   :  { %s648_s14 = smov 0   ;;  %s650_s15 = smov 0  }
   0x5 LB: > { %s665_s16 = sadd.s32 4294967295, %s614_s15   ;;  %s438_s17 = sadd.s32 4294967294, %s614_s15   ;;  %s614_s15 = sphi %s650_s15, %s833_s15   ;;  %s610_s14 = sphi %s648_s14, %s832_s14   ;;  %s606_s13 = sphi %s646_s13, %s831_s13   ;;  %s602_s12 = sphi %s644_s12, %s830_s12  }
   0x6   : > { %s669_s18 = sadd.s32 1, %s614_s15   ;;  %s52_s19 = sadd.s32 1, %s610_s14 }
   0x7   : > { %s49_s20 = ssub.s32 %s614_s15, %s669_s18  ;;  %p59_p0 = scmp.ne.s32.totalorder %s610_s14, %s606_s13 }
   0x8   : > { %p50_p1 = scmp.eq.s32.totalorder %s49_s20, 0  ;;  %p60_p2 = scmp.eq.s32.totalorder %s614_s15, 0 }
   0x9   : > { %p65_p3 = scmp.ne.s32.totalorder %s606_s13, %s602_s12  ;;  %p66_p4 = scmp.eq.s32.totalorder %s665_s16, 0 }
   0xa   : > { %s681_s21 = scalar_select %p50_p1, %s610_s14, %s52_s19  }
   0xb   : > { %p683_p5 = por %p60_p2, %p59_p0  ;;  %p687_p6 = por %p66_p4, %p65_p3 }
   0xc   : > { %p110_p7 = scmp.eq.s32.totalorder %s665_s16, 1  ;;  %p116_p8 = scmp.eq.s32.totalorder %s438_s17, 1 }
   0xd   : > { %s822_s23 = scalar_select %p687_p6, 1, 0 }
   0xe   : > { %p480_p10 = scmp.lt.s32.totalorder %s614_s15, 2  ;;  %p694_p11 = por %p110_p7, %p59_p0 }
   0xf   : > { %p698_p12 = por %p116_p8, %p65_p3  ;;  %s148_s26 = sand.u32 1, %s610_s14  }
  0x10   : > { %s823_s24 = scalar_select %p694_p11, 1, 0 }
  0x11   : > { %s824_s25 = scalar_select %p698_p12, 1, 0 }
  0x12   : > { %s463_s27 = sshll.u32 %s614_s15, 9  ;;  %s441_s28 = sshll.u32 %s148_s26, 5 }
  0x13   : > { %s707_s4 = scalar_lea.hbm %s816_s1, %s463_s27  ;;  %s152_s5 = scalar_lea.vmem [#allocation2], %s441_s28 }
  0x14   : > { %s160_s6 = sshll.u32 %s152_s5, 4  ;;  %p711_p13 = pnand %p480_p10, %p683_p5  ;;  %s715_s6 = int_to_ptr.vmem [resolvable:$true] %s160_s6 }
  0x15   : > { %s717_s8 = scalar_lea.sflag [#allocation3], %s148_s26  ;;  %s522_s9 = scalar_lea.hbm %s707_s4, 512 }
  0x16   : > { %p523_p0 = scmp.ne.s32.totalorder %s707_s4, %s522_s9  ;;  %p524_p1 = pneg %p711_p13 }
  0x17   : > { %s527_s17 = scalar_lea.hbm %s816_s1, 1024  ;;  %p528_p4 = scmp.lt.s32.totalorder %s707_s4, %s816_s1 }
  0x18   : > { %p525_p2 = pnand %p524_p1, %p523_p0  ;;  %p529_p5 = scmp.lt.s32.totalorder %s527_s17, %s522_s9 }
  0x1a   : > { %p526_p3 = pneg %p525_p2  ;;  %p530_p7 = por %p529_p5, %p528_p4 }
  0x1c   : > { %p531_p8 = pnand %p530_p7, %p526_p3 }
  0x1e   : > { %534 = shalt.err (!%p531_p8)
}
  0x1f   : > { %s535_s22 = scalar_lea.vmem %s715_s6, 512  ;;  %s616_s26 = smov [#allocation2]  }
  0x20   : > { %p536_p10 = scmp.ne.s32.totalorder %s715_s6, %s535_s22  ;;  %s540_s27 = sshll.u32 %s616_s26, 4  ;;  %s541_s27 = int_to_ptr.vmem [resolvable:$false] %s540_s27 }
  0x21   : > { %s542_s28 = scalar_lea.vmem %s541_s27, 1024  ;;  %p543_p2 = scmp.lt.s32.totalorder %s715_s6, %s541_s27 }
  0x22   : > { %p538_p9 = pnand %p536_p10, %p524_p1  ;;  %p544_p12 = scmp.lt.s32.totalorder %s542_s28, %s535_s22 }
  0x24   : > { %p539_p0 = pneg %p538_p9  ;;  %p545_p11 = por %p544_p12, %p543_p2 }
  0x26   : > { %p546_p6 = pnand %p545_p11, %p539_p0 }
  0x28   : > { %549 = shalt.err (!%p546_p6)
}
  0x29   : > { %s617_s29 = smov 256   ;;  %s618_s30 = smov 16  }
  0x2a   : > { %475 = dma.hbm_to_vmem [thread:$0]  (!%p711_p13), %s707_s4, 512, %s715_s6, %s717_s8, %s617_s29, %s617_s29, %s618_s30  }
  0x2b   : > { %p445_p9 = scmp.ge.s32.totalorder %s614_s15, 1  ;;  %p168_p1 = scmp.lt.s32.totalorder %s614_s15, 3 }
  0x2d   : > { %p169_p3 = pnand %p445_p9, %p168_p1 }
  0x2e   : > { %s741_s5 = sand.u32 (!%p169_p3), 1, %s606_s13   ;;  %p826_p6 = scmp.ne.s32.totalorder (!%p169_p3), %s822_s23, 0 }
  0x2f   : > { %172 = sbr.rel (%p169_p3) target bundleno = 403 (0x193), region = 32  ;;  %s446_s9 = sshll.u32 (!%p169_p3), %s741_s5, 5 }
  0x30   : > { %s175_s10 = scalar_lea.sflag (!%p169_p3), [#allocation3], %s741_s5  ;;  %s747_s11 = scalar_lea.vmem (!%p169_p3), [#allocation2], %s446_s9 }
  0x34   : > { %593 = dma.done.wait (%p826_p6), %s175_s10, 512  }
  0x35   : > { %595 = vsyncadd (%p826_p6), %s175_s10, 4294966784  ;;  %s448_s4 = sshll.u32 %s665_s16, 1  ;;  %v619_v0 = vmov 0   ;;  %v620_v1 = vmov 0.0   ;;  %v230_v3 = vld [vmem:[%s817_s2] sm:$0xff]  ;;  %vm240_vm0 = vcmask 1043456   ;;  %v216_v6 = vlaneseq }
  0x36   : > { %520 = vset.pattern.permute.xlu0 %v619_v0  ;;  %p207_p11 = scmp.lt.s32.totalorder %s448_s4, 3  ;;  %309 = vmatprep.mubr.f32.mxu0 %v620_v1  ;;  %v232_v4 = vcombine.high %v230_v3, %v230_v3  ;;  %vm233_vm1 = vcmask 31744   ;;  %v326_v13 = vld [vmem:[%s747_s11] sm:$0xff]  ;;  %v327_v16 = vld [vmem:[%s747_s11 + $0x8] sm:$0xff]  ;;  %s205_s23 = scalar_lea.vmem [#allocation5], %s446_s9  ;;  %v328_v20 = vld [vmem:[%s747_s11 + $0x10] sm:$0xff] }
  0x37   : > { %315 = vmatprep.mubr.f32.mxu1 %v620_v1  ;;  %v217_v7 = vand.u32 127, %v216_v6  ;;  %s353_s22 = sshll.u32 %s205_s23, 4  ;;  %s465_s26 = sshll.u32 %s665_s16, 9  ;;  %v329_v24 = vld [vmem:[%s747_s11 + $0x18] sm:$0xff]  ;;  %s767_s22 = int_to_ptr.vmem [resolvable:$true] %s353_s22 }
  0x38   : > { %s835_s4 = smov (!%p207_p11, %s448_s4), 3  ;;  %452 = vmatprep.subr.msk.mxu0 %vm240_vm0, %v232_v4  ;;  %466 = vmatprep.subr.msk.mxu1 %vm240_vm0, %v232_v4  ;;  %s772_s29 = scalar_lea.hbm %s818_s3, %s465_s26 }
  0x39   : > { %s449_s6 = sshll.u32 %s835_s4, 3  ;;  %453 = vmatpush1.msk.msra.mxu0 %vm240_vm0, %v230_v3  ;;  %467 = vmatpush1.msk.msra.mxu1 %vm240_vm0, %v230_v3  ;;  %s339_s30 = scalar_lea.sflag [#allocation4], %s741_s5 }
  0x3a   : > { %s210_s17 = scalar_lea.vmem %s815_s0, %s449_s6  ;;  %s550_s16 = scalar_lea.vmem %s767_s22, 512 }
  0x3b   : > { %v214_v2 = vld [vmem:[%s210_s17] sm:$0xff]  ;;  %v215_v5 = vld [vmem:[%s210_s17 + $0x8] sm:$0xff]  ;;  %p551_p12 = scmp.ne.s32.totalorder %s767_s22, %s550_s16  ;;  %p827_p13 = scmp.ne.s32.totalorder %s823_s24, 0 }
  0x3c   : > { %219 = vperm.xlu0 %520, %v214_v2   ;;  %s621_s9 = smov [#allocation5]  }
  0x3d   : > { %p552_p4 = pnand %p551_p12, %p827_p13  ;;  %s554_s10 = sshll.u32 %s621_s9, 4  ;;  %s555_s10 = int_to_ptr.vmem [resolvable:$false] %s554_s10 }
  0x3e   : > { %s556_s11 = scalar_lea.vmem %s555_s10, 1024  ;;  %p557_p7 = scmp.lt.s32.totalorder %s767_s22, %s555_s10 }
  0x3f   : > { %p553_p5 = pneg %p552_p4  ;;  %p558_p8 = scmp.lt.s32.totalorder %s556_s11, %s550_s16 }
  0x40   : > { %222 = vperm.xlu0 %520, %v215_v5  }
  0x41   : > { %p559_p10 = por %p558_p8, %p557_p7 }
  0x43   : > { %p560_p0 = pnand %p559_p10, %p553_p5 }
  0xb7   : > { %v220_v8 = vpop.permute.xlu0 %219 }
  0xb8   : > { %vm224_vm2 = vcmp.eq.s32.totalorder %v220_v8, %v217_v7 }
  0xb9   : > { %v450_v9 = vsel %vm224_vm2, 1.0, %v620_v1 }
  0xba   : > { %454 = vmatmul.mubr.msk.f32.vlgmr.msra.gmra.mxu0 %vm233_vm1, %v450_v9 }
  0xbb   : > { %v223_v10 = vpop.permute.xlu0 %222 }
  0xbc   : > { %vm225_vm3 = vcmp.eq.s32.totalorder %v223_v10, %v217_v7 }
  0xbd   : > { %v451_v11 = vsel %vm225_vm3, 1.0, %v620_v1 }
  0xbe   : > { %455 = vmatmul.mubr.msk.f32.vlgmr.msra.gmra.mxu1 %vm233_vm1, %v451_v11 }
 0x17a   : > { %v311_v12 = vpop.f32.mrf.mxu0 }
 0x17b   : > { %v322_v14 = vmul.f32 2.0, %v311_v12 }
 0x17c   : > { %v313_v15 = vpop.f32.mrf.mxu0 }
 0x17d   : > { %v330_v17 = vmul.f32 %v326_v13, %v322_v14  ;;  %v323_v18 = vmul.f32 2.0, %v313_v15 }
 0x17e   : > { %v317_v19 = vpop.f32.mrf.mxu1 }
 0x17f   : > { %334 = vst [vmem:[%s205_s23] sm:$0xff] %v330_v17  ;;  %v331_v21 = vmul.f32 %v327_v16, %v323_v18  ;;  %v324_v22 = vmul.f32 2.0, %v317_v19 }
 0x180   : > { %v319_v23 = vpop.f32.mrf.mxu1 }
 0x181   : > { %335 = vst [vmem:[%s205_s23 + $0x8] sm:$0xff] %v331_v21  ;;  %v332_v25 = vmul.f32 %v328_v20, %v324_v22  ;;  %v325_v26 = vmul.f32 2.0, %v319_v23 }
 0x183   : > { %336 = vst [vmem:[%s205_s23 + $0x10] sm:$0xff] %v332_v25  ;;  %v333_v27 = vmul.f32 %v329_v24, %v325_v26 }
 0x185   : > { %337 = vst [vmem:[%s205_s23 + $0x18] sm:$0xff] %v333_v27 }
 0x186   : > { %563 = shalt.err (!%p560_p0)
}
 0x187   : > { %s564_s4 = scalar_lea.hbm %s772_s29, 512  ;;  %s568_s8 = scalar_lea.hbm %s818_s3, 1024 }
 0x188   : > { %p565_p2 = scmp.ne.s32.totalorder %s772_s29, %s564_s4  ;;  %p569_p3 = scmp.lt.s32.totalorder %s772_s29, %s818_s3 }
 0x189   : > { %p570_p6 = scmp.lt.s32.totalorder %s568_s8, %s564_s4 }
 0x18a   : > { %p566_p9 = pnand %p565_p2, %p827_p13 }
 0x18b   : > { %p571_p11 = por %p570_p6, %p569_p3 }
 0x18c   : > { %p567_p1 = pneg %p566_p9 }
 0x18e   : > { %p572_p12 = pnand %p571_p11, %p567_p1 }
 0x190   : > { %575 = shalt.err (!%p572_p12)
}
 0x191   : > { %s622_s20 = smov 256   ;;  %s623_s23 = smov 16  }
 0x192   : > { %470 = dma.vmem_to_hbm [thread:$0]  (%p827_p13), %s767_s22, 512, %s772_s29, %s339_s30, %s622_s20, %s622_s20, %s623_s23  }
 0x193 PF: > { %s368_s26 = sand.u32 1, %s602_s12   ;;  %p828_p4 = scmp.ne.s32.totalorder %s824_s25, 0 }
 0x194   : > { %p829_p5 = scmp.ge.s32.totalorder %s614_s15, 2  ;;  %s369_s27 = scalar_lea.sflag [#allocation4], %s368_s26 }
 0x196   : > { %p477_p7 = pnand %p829_p5, %p828_p4 }
 0x198   : > { %p478_p8 = pneg %p477_p7 }
 0x19a   : > { %597 = dma.done.wait (%p478_p8), %s369_s27, 512  }
 0x19b   : > { %599 = vsyncadd (%p478_p8), %s369_s27, 4294966784  ;;  %p16_p10 = scmp.ge.s32.totalorder %s669_s18, 4   ;;  %s830_s12 = smov %s606_s13 }
 0x19c   : > { %s831_s13 = smov %s610_s14  ;;  %s832_s14 = smov %s681_s21 }
 0x19d   : > { %s833_s15 = smov %s669_s18  ;;  %18 = sbr.rel (!%p16_p10) target bundleno = 5 (0x5), region = 80 }
 0x1a2   :  { %374 = vsyncpa [#allocation3], 1 }
 0x1a3   :  { %376 = vsyncpa [#allocation3 + $0x1], 1 }
 0x1a4   :  { %377 = vsyncpa [#allocation4], 1 }
 0x1a5   :  { %379 = vsyncpa [#allocation4 + $0x1], 1 }

</bundles_post_ra>
